<compile_context>
chip_gen: v7x
topology: tpu7x:2x2x1
jax: 0.10.0
libtpu: 0.0.40
codegen_flags: <defaults>
</compile_context>

<pallas_src>
import jax
import jax.numpy as jnp
from jax import lax
from jax.experimental import pallas as pl
from jax.experimental.pallas import tpu as pltpu


# ----------------------------------------------------------------------------
# Hardware-aware tile budget.
# ----------------------------------------------------------------------------
def _tile_budget():
    """Returns (per-input-tile byte target, cap for vmem_limit_bytes)."""
    vmem_cap = None
    try:
        info = pltpu.get_tpu_info()
        vmem_cap = getattr(info, "vmem_capacity_bytes", None)
    except Exception:  # not resolvable at trace time: fall back conservatively
        vmem_cap = None
    if vmem_cap is None:
        vmem_cap = 64 << 20          # assume the tightest chip (v7x: 64 MiB/TC)
    if vmem_cap >= (100 << 20):      # v5e / v6e: 128 MiB physical VMEM
        target = 8 << 20             # 2x2 buffers x 8 MiB leaves plenty of room
    else:                            # v7x: 64 MiB per TensorCore
        target = 5 << 20             # <= ~25 MiB when double/triple-buffered
    limit_cap = max(32 << 20, vmem_cap - (24 << 20))
    return target, limit_cap


def _round_to(x, mult):
    return max(mult, (x // mult) * mult)


def _maybe_buffered_spec(block_shape, index_map, nbuf):
    """BlockSpec with pipeline_mode=pl.Buffered(nbuf); fall back if unsupported."""
    try:
        return pl.BlockSpec(block_shape, index_map, pipeline_mode=pl.Buffered(nbuf))
    except (AttributeError, TypeError):
        return pl.BlockSpec(block_shape, index_map)


# ----------------------------------------------------------------------------
# BCE-with-logits partial-sum kernels (per-tile partials, finalized in wrapper).
# ----------------------------------------------------------------------------
def _make_flat_bce_kernel(n_valid, tb, lw, ragged):
    """Lane-dense path: (tb, lw) tile of the flattened (logits, targets) streams."""

    def kernel(x_ref, t_ref, o_ref):
        x = x_ref[...].astype(jnp.float32)
        t = t_ref[...].astype(jnp.float32)
        # torch's numerically stable BCEWithLogits formulation.
        per = jnp.maximum(x, 0.0) - x * t + jnp.log1p(jnp.exp(-jnp.abs(x)))
        if ragged:
            # Mask lane padding and rows past the true element count *before*
            # the reduction so padded garbage cannot reach the sum.
            row = pl.program_id(0) * tb + lax.broadcasted_iota(jnp.int32, per.shape, 0)
            lane = lax.broadcasted_iota(jnp.int32, per.shape, 1)
            per = jnp.where(row * lw + lane < n_valid, per, 0.0)
        o_ref[...] = jnp.sum(per, axis=0, keepdims=True)[None]

    return kernel


def _make_fused_bce_kernel(batch, tb, ragged):
    """Large-D path: (tb, D) row tile; targets arrive via the fused y[:, -1] spec."""

    def kernel(x_ref, t_ref, o_ref):
        x = x_ref[...].astype(jnp.float32)
        t = t_ref[...].astype(jnp.float32)
        per = jnp.maximum(x, 0.0) - x * t + jnp.log1p(jnp.exp(-jnp.abs(x)))
        if ragged:
            row = pl.program_id(0) * tb + lax.broadcasted_iota(jnp.int32, per.shape, 0)
            per = jnp.where(row < batch, per, 0.0)
        o_ref[...] = jnp.sum(per, axis=0, keepdims=True)[None]

    return kernel


def dp_loss(x, y, *, row_tile=None, lane_width=None):
    """DPLoss()(x, y) = BCEWithLogitsLoss(mean)(x, y[:, -1]).

    x: (B, D) logits; y: (B, S, D) targets, last time step is the label.
    Returns a scalar float32 loss.
    """
    B, D = x.shape
    S = y.shape[1]
    n = B * D
    x_isz = jnp.dtype(x.dtype).itemsize
    y_isz = jnp.dtype(y.dtype).itemsize
    max_isz = max(x_isz, y_isz)
    # Sublane packing multiple of the narrowest input dtype (8 f32 / 16 bf16 / 32 i8).
    pack = max(8, 32 // min(x_isz, y_isz))

    target_bytes, limit_cap = _tile_budget()

    # Fused strided y[:, -1] DMA only pays off for lane-full, >= 512 B rows.
    use_flat = (D < 128) or (D % 128 != 0) or (D * y_isz < 512)

    if use_flat:
        # Pre-slice the target once (contiguous copy), then present both streams
        # lane-dense as (rows, LW) with LW a multiple of 128.
        t = y[:, -1]
        lw = lane_width if lane_width is not None else (512 if n >= 512 else 128)
        xf, tf = x.reshape(-1), t.reshape(-1)
        n_pad = pl.cdiv(n, lw) * lw
        if n_pad != n:
            xf = jnp.pad(xf, (0, n_pad - n))
            tf = jnp.pad(tf, (0, n_pad - n))
        rows = n_pad // lw
        xf, tf = xf.reshape(rows, lw), tf.reshape(rows, lw)

        tb = row_tile if row_tile is not None else _round_to(
            target_bytes // (lw * max_isz), pack)
        tb = min(tb, rows)
        num_tiles = pl.cdiv(rows, tb)
        ragged = (num_tiles * tb * lw) != n

        kernel = _make_flat_bce_kernel(n, tb, lw, ragged)
        in_specs = [pl.BlockSpec((tb, lw), lambda i: (i, 0)),
                    pl.BlockSpec((tb, lw), lambda i: (i, 0))]
        operands = (xf, tf)
        lanes_out = lw
        tile_bytes = 2 * tb * lw * x_isz + 2 * tb * lw * y_isz
        bytes_in = n_pad * (x_isz + y_isz)
    else:
        # Fused y[:, -1] slice: the label path is read from HBM exactly once.
        tb = row_tile if row_tile is not None else _round_to(
            target_bytes // (D * max_isz), pack)
        tb = min(tb, B)
        num_tiles = pl.cdiv(B, tb)
        ragged = (num_tiles * tb) != B

        kernel = _make_fused_bce_kernel(B, tb, ragged)
        in_specs = [pl.BlockSpec((tb, D), lambda i: (i, 0)),
                    _maybe_buffered_spec((tb, None, D), lambda i: (i, S - 1, 0), 3)]
        operands = (x, y)
        lanes_out = D
        tile_bytes = 2 * tb * D * x_isz + 3 * tb * D * y_isz
        bytes_in = n * (x_isz + y_isz)

    vmem_limit = int(min(limit_cap, max(tile_bytes + (8 << 20), 16 << 20)))

    partials = pl.pallas_call(
        kernel,
        out_shape=jax.ShapeDtypeStruct((num_tiles, 1, lanes_out), jnp.float32),
        grid=(num_tiles,),
        in_specs=in_specs,
        # Trailing block dims (1, lanes_out) equal the full array dims -> clean,
        # lane-dense output stores.
        out_specs=pl.BlockSpec((1, 1, lanes_out), lambda i: (i, 0, 0)),
        compiler_params=pltpu.CompilerParams(
            # Independent per-tile partials; "parallel" lets the two v7x
            # TensorCores stream half the grid each (no-op on 1-TC v5e/v6e).
            # TODO(synk): confirm on a v7x bundle dump that this shards across
            # both cores; fall back to pltpu.CORE_PARALLEL / pl.core_map if the
            # EUP (exp + log1p) becomes the binding slot at 3.2 TB/s.
            dimension_semantics=("parallel",),
            vmem_limit_bytes=vmem_limit,
        ),
        cost_estimate=pl.CostEstimate(
            flops=6 * n,
            transcendentals=2 * n,
            bytes_accessed=int(bytes_in) + num_tiles * lanes_out * 4,
        ),
    )(*operands)

    # Finalize: one tiny sum + one multiply by a precomputed 1/n.
    return jnp.sum(partials) * jnp.float32(1.0 / n)


# ----------------------------------------------------------------------------
# MultiSRAMP task-mixing head: softmax(r[:, :, 0]) * r[:, :, -1], summed over
# tasks (the tail of MultiSRAMP.forward). Tiny whole-array kernel.
# ----------------------------------------------------------------------------
def _multisramp_head_kernel(logit_ref, val_ref, o_ref):
    lg = logit_ref[...].astype(jnp.float32)
    v = val_ref[...].astype(jnp.float32)
    m = jnp.max(lg, axis=-1, keepdims=True)
    e = jnp.exp(lg - m)
    w = e / jnp.sum(e, axis=-1, keepdims=True)
    o_ref[...] = jnp.sum(w * v, axis=-1, keepdims=True)


def multisramp_head(per_task):
    """per_task: (B, T, 2) per-task SRAMP outputs -> (B, 1) mixed output."""
    B, T, _ = per_task.shape
    logits = per_task[:, :, 0]
    vals = per_task[:, :, -1]
    return pl.pallas_call(
        _multisramp_head_kernel,
        out_shape=jax.ShapeDtypeStruct((B, 1), jnp.float32),
    )(logits, vals)


# ----------------------------------------------------------------------------
# References.
# ----------------------------------------------------------------------------
def _reference_dp_loss(x, y):
    t = y[:, -1].astype(jnp.float32)
    xf = x.astype(jnp.float32)
    per = jnp.maximum(xf, 0.0) - xf * t + jnp.log1p(jnp.exp(-jnp.abs(xf)))
    return jnp.mean(per)


if __name__ == "__main__":
    key = jax.random.PRNGKey(0)
    k1, k2, k3, k4, k5, k6, k7 = jax.random.split(key, 7)

    # --- DPLoss head: small-D lane-dense path (B=2, S=8, D=32) --------------
    B, S, D = 2, 8, 32
    x = jax.random.normal(k1, (B, D), dtype=jnp.float32)
    y = jax.random.uniform(k2, (B, S, D), dtype=jnp.float32)
    loss = dp_loss(x, y)
    jax.block_until_ready(loss)
    ref = _reference_dp_loss(x, y)
    assert jnp.allclose(loss, ref, atol=1e-5, rtol=1e-5), (loss, ref)

    # --- DPLoss head: multi-tile lane-dense path with masked ragged tail ----
    B2, S2, D2 = 40, 8, 32
    x2 = jax.random.normal(k3, (B2, D2), dtype=jnp.float32)
    y2 = jax.random.uniform(k4, (B2, S2, D2), dtype=jnp.float32)
    loss2 = dp_loss(x2, y2, row_tile=8, lane_width=128)  # 10 rows -> 2 tiles
    jax.block_until_ready(loss2)
    ref2 = _reference_dp_loss(x2, y2)
    assert jnp.allclose(loss2, ref2, atol=1e-5, rtol=1e-5), (loss2, ref2)

    # --- DPLoss head: large-D fused strided y[:, -1] path (mixed dtypes) ----
    B3, S3, D3 = 24, 4, 128
    x3 = jax.random.normal(k5, (B3, D3), dtype=jnp.float32).astype(jnp.bfloat16)
    y3 = jax.random.uniform(k6, (B3, S3, D3), dtype=jnp.float32)
    loss3 = dp_loss(x3, y3, row_tile=16)                 # 2 row tiles, ragged
    jax.block_until_ready(loss3)
    ref3 = _reference_dp_loss(x3, y3)
    assert jnp.allclose(loss3, ref3, atol=1e-4, rtol=1e-4), (loss3, ref3)

    # --- MultiSRAMP task-mixing head -----------------------------------------
    T = 8
    r = jax.random.normal(k7, (B, T, 2), dtype=jnp.float32)
    mixed = multisramp_head(r)
    jax.block_until_ready(mixed)
    w = jax.nn.softmax(r[:, :, 0], axis=-1)
    ref_mix = jnp.sum(w * r[:, :, -1], axis=-1, keepdims=True)
    assert jnp.allclose(mixed, ref_mix, atol=1e-5, rtol=1e-5), (mixed, ref_mix)

    print("KERNEL_OK")
</pallas_src>

<mosaic_0001>
module attributes {stable_mosaic.version = 11 : i64} {
  func.func @kernel(%arg0: i32, %arg1: memref<1x128xf32, #tpu.memory_space<vmem>>, %arg2: memref<1x128xf32, #tpu.memory_space<vmem>>, %arg3: memref<1x1x128xf32, #tpu.memory_space<vmem>>) attributes {dimension_semantics = [#tpu.dimension_semantics<parallel>], iteration_bounds = array<i64: 1>, scalar_prefetch = 0 : i64, scratch_operands = 0 : i64, tpu.core_type = #tpu.core_type<tc>, window_params = [{transform_indices = @transform_0, window_bounds = array<i64: 1, 128>}, {transform_indices = @transform_1, window_bounds = array<i64: 1, 128>}, {transform_indices = @transform_2, window_bounds = array<i64: 1, 1, 128>}]} {
    %c0 = arith.constant 0 : index
    %c0_0 = arith.constant 0 : index
    %0 = vector.load %arg1[%c0, %c0_0] : memref<1x128xf32, #tpu.memory_space<vmem>>, vector<1x128xf32>
    %c0_1 = arith.constant 0 : index
    %c0_2 = arith.constant 0 : index
    %1 = vector.load %arg2[%c0_1, %c0_2] : memref<1x128xf32, #tpu.memory_space<vmem>>, vector<1x128xf32>
    %cst = arith.constant 0.000000e+00 : f32
    %2 = vector.broadcast %cst : f32 to vector<1x128xf32>
    %3 = arith.maximumf %0, %2 : vector<1x128xf32>
    %4 = arith.mulf %0, %1 : vector<1x128xf32>
    %5 = arith.subf %3, %4 : vector<1x128xf32>
    %6 = math.absf %0 : vector<1x128xf32>
    %cst_3 = arith.constant 0.000000e+00 : f32
    %7 = vector.broadcast %cst_3 : f32 to vector<1x128xf32>
    %8 = arith.subf %7, %6 : vector<1x128xf32>
    %9 = math.exp %8 : vector<1x128xf32>
    %10 = math.log1p %9 : vector<1x128xf32>
    %11 = arith.addf %5, %10 : vector<1x128xf32>
    %c1_i32 = arith.constant 1 : i32
    %12 = arith.muli %arg0, %c1_i32 : i32
    %13 = tpu.iota {dimensions = array<i32: 0>} : vector<1x128xi32>
    %14 = vector.broadcast %12 : i32 to vector<1x128xi32>
    %15 = arith.addi %14, %13 : vector<1x128xi32>
    %16 = tpu.iota {dimensions = array<i32: 1>} : vector<1x128xi32>
    %c128_i32 = arith.constant 128 : i32
    %17 = vector.broadcast %c128_i32 : i32 to vector<1x128xi32>
    %18 = arith.muli %15, %17 : vector<1x128xi32>
    %19 = arith.addi %18, %16 : vector<1x128xi32>
    %c64_i32 = arith.constant 64 : i32
    %20 = vector.broadcast %c64_i32 : i32 to vector<1x128xi32>
    %21 = arith.cmpi slt, %19, %20 : vector<1x128xi32>
    %cst_4 = arith.constant 0.000000e+00 : f32
    %22 = vector.broadcast %cst_4 : f32 to vector<1x128xf32>
    %23 = arith.select %21, %11, %22 : vector<1x128xi1>, vector<1x128xf32>
    %cst_5 = arith.constant dense<0.000000e+00> : vector<128xf32>
    %24 = vector.multi_reduction <add>, %23, %cst_5 [0] : vector<1x128xf32> to vector<128xf32>
    %25 = vector.shape_cast %24 : vector<128xf32> to vector<1x128xf32>
    %26 = vector.shape_cast %25 : vector<1x128xf32> to vector<1x1x128xf32>
    %c0_6 = arith.constant 0 : index
    %c0_7 = arith.constant 0 : index
    %c0_8 = arith.constant 0 : index
    %27 = vector.load %arg3[%c0_6, %c0_7, %c0_8] : memref<1x1x128xf32, #tpu.memory_space<vmem>>, vector<1x1x128xf32>
    tpu.vector_store %arg3[%c0_6, %c0_7, %c0_8], %26 {strides = array<i32>} : memref<1x1x128xf32, #tpu.memory_space<vmem>>, vector<1x1x128xf32>,
    return
  }
  func.func @transform_0(%arg0: i32) -> (i32, i32) {
    %c0_i32 = arith.constant 0 : i32
    %c0_i32_0 = arith.constant 0 : i32
    return %arg0, %c0_i32 : i32, i32
  }
  func.func @transform_1(%arg0: i32) -> (i32, i32) {
    %c0_i32 = arith.constant 0 : i32
    %c0_i32_0 = arith.constant 0 : i32
    return %arg0, %c0_i32 : i32, i32
  }
  func.func @transform_2(%arg0: i32) -> (i32, i32, i32) {
    %c0_i32 = arith.constant 0 : i32
    %c0_i32_0 = arith.constant 0 : i32
    %c0_i32_1 = arith.constant 0 : i32
    return %arg0, %c0_i32, %c0_i32_0 : i32, i32, i32
  }
}

</mosaic_0001>

<bundles_post_ra>
// kernel: tpu_custom_call.1
= control target key start
LH: loop header
LB: loop body
LE: loop exit
PB: predicated region body
PF: predicated region fallthrough
CT: control target
= control target key end

     0   :  { %7 = vsyncpa [#allocation3], 0  ;;  %s168_s0 = inlined_call_operand.hbm [shape: f32[1,128], index: 0, kind: input, shape index: {}]   ;;  %s169_s1 = inlined_call_operand.vmem [shape: f32[1,128], index: 1, kind: input, shape index: {}]   ;;  %s170_s2 = inlined_call_operand.hbm [shape: f32[1,1,128], index: 2, kind: output, shape index: {}]  }
   0x1   :  { %8 = vsyncpa [#allocation4], 0  ;;  %s124_s9 = smov [#allocation2]   ;;  %s76_s13 = scalar_lea.hbm %s168_s0, 16 }
   0x2   :  { %s15_s10 = sshll.u32 %s124_s9, 4  ;;  %p77_p0 = scmp.ne.s32.totalorder %s168_s0, %s76_s13  ;;  %s16_s10 = int_to_ptr.vmem [resolvable:$true] %s15_s10 }
   0x3   :  { %p80_p1 = scmp.lt.u32.totalorder %s76_s13, %s168_s0 }
   0x5   :  { %p82_p2 = pnand %p80_p1, %p77_p0 }
   0x7   :  { %85 = shalt.err (!%p82_p2)
}
   0x8   :  { %s86_s18 = scalar_lea.vmem %s16_s10, 16  ;;  %s90_s19 = scalar_lea.vmem %s16_s10, 32 }
   0x9   :  { %p87_p3 = scmp.ne.s32.totalorder %s16_s10, %s86_s18  ;;  %p91_p4 = scmp.lt.s32.totalorder %s16_s10, %s16_s10 }
   0xa   :  { %p92_p5 = scmp.lt.s32.totalorder %s90_s19, %s86_s18 }
   0xc   :  { %p93_p6 = por %p92_p5, %p91_p4 }
   0xe   :  { %p94_p7 = pnand %p93_p6, %p87_p3 }
  0x10   :  { %97 = shalt.err (!%p94_p7)
}
  0x11   :  { %18 = dma.hbm_to_vmem [thread:$0]  %s168_s0, 16, %s16_s10, [#allocation3]  }
  0x12   :  { %120 = dma.done.wait [#allocation3], 16  }
  0x13   :  { %121 = vsyncadd [#allocation3], 4294967280  ;;  %v24_v0 = vld [vmem:[#allocation2] sm:$0x1]  ;;  %v43_v5 = vlaneseq  ;;  %s125_s0 = smov [#allocation5]  }
  0x14   :  { %v29_v1 = vand.u32 2147483647, %v24_v0  ;;  %v25_v9 = vld [vmem:[%s169_s1] sm:$0x1]  ;;  %v26_v13 = vmax.f32 %v24_v0, 0.0  ;;  %s61_s24 = sshll.u32 %s125_s0, 4  ;;  %s62_s24 = int_to_ptr.vmem [resolvable:$true] %s61_s24 }
  0x15   :  { %v44_v8 = vshrl.u32 %v43_v5, 7  ;;  %v48_v11 = vand.u32 127, %v43_v5  ;;  %v27_v14 = vmul.f32 %v25_v9, %v24_v0  ;;  %s98_s1 = scalar_lea.vmem %s62_s24, 16  ;;  %s102_s25 = scalar_lea.vmem %s62_s24, 32 }
  0x16   :  { %v30_v2 = vsub.f32 0.0, %v29_v1  ;;  %p99_p8 = scmp.ne.s32.totalorder %s62_s24, %s98_s1  ;;  %p103_p9 = scmp.lt.s32.totalorder %s62_s24, %s62_s24 }
  0x17   :  { %v49_v12 = vmul.u32 128, %v44_v8  ;;  %v28_v19 = vsub.f32 %v26_v13, %v27_v14  ;;  %p104_p10 = scmp.lt.s32.totalorder %s102_s25, %s98_s1 }
  0x18   :  { %v31_v3 = vmul.f32 1.442695, %v30_v2 }
  0x19   :  { %v50_v17 = vadd.s32 %v49_v12, %v48_v11  ;;  %p105_p11 = por %p104_p10, %p103_p9 }
  0x1a   :  { %72 = vpow2.f32 %v31_v3 }
  0x1b   :  { %vm51_vm1 = vcmp.lt.s32.totalorder %v50_v17, 64  ;;  %p106_p12 = pnand %p105_p11, %p99_p8 }
  0x24   :  { %v73_v4 = vpop.eup %72 }
  0x25   :  { %v33_v6 = vadd.f32 1.0, %v73_v4  ;;  %v36_v7 = vmul.f32 -0.5, %v73_v4  ;;  %v39_v15 = vand.u32 2147483647, %v73_v4 }
  0x27   :  { %74 = vlog2.f32 %v33_v6  ;;  %v37_v10 = vadd.f32 1.0, %v36_v7  ;;  %vm40_vm0 = vcmp.lt.f32.partialorder %v39_v15, 0.0004427343 }
  0x29   :  { %v38_v16 = vmul.f32 %v73_v4, %v37_v10 }
  0x31   :  { %v75_v18 = vpop.eup %74 }
  0x32   :  { %v35_v20 = vmul.f32 0.6931472, %v75_v18 }
  0x34   :  { %v41_v21 = vsel %vm40_vm0, %v38_v16, %v35_v20 }
  0x35   :  { %v42_v22 = vadd.f32 %v41_v21, %v28_v19 }
  0x37   :  { %v52_v23 = vsel %vm51_vm1, %v42_v22, 0.0 }
  0x38   :  { %54 = vst [vmem:[#allocation5] sm:$0x1] %v52_v23 }
  0x39   :  { %109 = shalt.err (!%p106_p12)
}
  0x3a   :  { %s110_s28 = scalar_lea.hbm %s170_s2, 16 }
  0x3b   :  { %p111_p13 = scmp.ne.s32.totalorder %s170_s2, %s110_s28  ;;  %p114_p0 = scmp.lt.u32.totalorder %s110_s28, %s170_s2 }
  0x3d   :  { %p116_p1 = pnand %p114_p0, %p111_p13 }
  0x3f   :  { %119 = shalt.err (!%p116_p1)
}
  0x40   :  { %64 = dma.vmem_to_hbm [thread:$0]  %s62_s24, 16, %s170_s2, [#allocation4]  }
  0x41   :  { %122 = dma.done.wait [#allocation4], 16  }
  0x42   :  { %123 = vsyncadd [#allocation4], 4294967280 }
  0x43   :  { %68 = vsyncpa [#allocation3], 1 }
  0x44   :  { %69 = vsyncpa [#allocation4], 1 }

</bundles_post_ra>
